<compile_context>
chip_gen: v6e
topology: v6e:2x2x1
jax: 0.10.0
libtpu: 0.0.40
codegen_flags: <defaults>
</compile_context>

<pallas_src>
import math
import jax
import jax.numpy as jnp
from jax.experimental import pallas as pl
from jax.experimental.pallas import tpu as pltpu

_LOG_SQRT_2PI = 0.5 * math.log(2.0 * math.pi)


def _transition_kernel(x_ref, next_ref,
                       w1_ref, b1_ref,
                       w2_ref, b2_ref,
                       wh_ref, bh_ref,
                       out_ref):
    # fc1 + relu :  [neu, in_dim] @ [in_dim, tb] -> [neu, tb]
    h1 = jnp.dot(w1_ref[...], x_ref[...],
                 preferred_element_type=jnp.float32) + b1_ref[...]
    h1 = jnp.maximum(h1, 0.0).astype(jnp.bfloat16)

    # fc2 + relu :  [neu, neu] @ [neu, tb] -> [neu, tb]
    h2 = jnp.dot(w2_ref[...], h1,
                 preferred_element_type=jnp.float32) + b2_ref[...]
    h2 = jnp.maximum(h2, 0.0).astype(jnp.bfloat16)

    # fused heads: [2*ad, neu] @ [neu, tb] -> [2*ad, tb]; sublane-aligned split
    y = jnp.dot(wh_ref[...], h2,
                preferred_element_type=jnp.float32) + bh_ref[...]
    ad = out_ref.shape[0]
    mu = y[:ad, :]
    log_std = y[ad:, :]

    # Normal(mu, exp(log_std)).log_prob(next_state), divide-free f32 form:
    #   = -0.5*(x-mu)^2 * exp(-2*log_std) - log_std - log(sqrt(2*pi))
    diff = next_ref[...] - mu
    inv_var = jnp.exp(-2.0 * log_std)          # EUP slot
    log_prob = -0.5 * diff * diff * inv_var - log_std - _LOG_SQRT_2PI
    out_ref[...] = log_prob.astype(out_ref.dtype)
    # TODO(synk): if callers only ever need sum(log_prob, axis=-1) (the PPO
    # scalar), add an in-kernel sublane reduce to [1, tile_b]; kept per-element
    # here to match the module's forward() semantics exactly.


def _round_up(x, m):
    return ((x + m - 1) // m) * m


def transition_net_forward(state, action, next_state, params, tile_b=None):
    """Pallas forward pass. Returns log_prob of next_state: [batch, abstraction_dim]."""
    B, abstraction_dim = state.shape
    (w1, b1, w2, b2, wh, bh) = params          # [out, in] / [out, 1]
    in_dim = w1.shape[1]                       # abstraction_dim + action_dim
    neu = w1.shape[0]

    # ---- batch (lane) tiling -------------------------------------------------
    if tile_b is None:
        if B <= 256:
            # One grid step, zero padding (full-array block waives (8,128) rule).
            tile_b = B
        else:
            # >= 2 lane-aligned tiles so the "parallel" batch axis can shard
            # across both TensorCores on v7x; capped to keep tiles modest.
            tile_b = min(2048, _round_up(pl.cdiv(B, 2), 128))
    else:
        tile_b = max(1, tile_b)
        if tile_b < B:
            tile_b = _round_up(tile_b, 128)    # multi-tile lane blocks need %128
    Bp = _round_up(B, tile_b)
    num_tiles = Bp // tile_b

    # ---- feature-major inputs: [features, Bp], batch in lanes ---------------
    xT = jnp.concatenate([state, action], axis=1).astype(jnp.bfloat16).T
    nxtT = next_state.astype(jnp.float32).T
    if Bp != B:
        pad = Bp - B
        xT = jnp.pad(xT, ((0, 0), (0, pad)))
        nxtT = jnp.pad(nxtT, ((0, 0), (0, pad)))

    # bf16 matmul operands; biases / epilogue stay f32.
    w1b = w1.astype(jnp.bfloat16)
    w2b = w2.astype(jnp.bfloat16)
    whb = wh.astype(jnp.bfloat16)

    batch_spec = lambda rows: pl.BlockSpec((rows, tile_b), lambda i: (0, i))
    full = lambda shp: pl.BlockSpec(shp, lambda i: (0, 0))

    out_T = pl.pallas_call(
        _transition_kernel,
        out_shape=jax.ShapeDtypeStruct((abstraction_dim, Bp), jnp.float32),
        grid=(num_tiles,),
        in_specs=[
            batch_spec(in_dim),               # x^T = [state|action]^T
            batch_spec(abstraction_dim),      # next_state^T
            full(w1b.shape), full(b1.shape),
            full(w2b.shape), full(b2.shape),
            full(whb.shape), full(bh.shape),
        ],
        out_specs=batch_spec(abstraction_dim),
        compiler_params=pltpu.CompilerParams(
            dimension_semantics=("parallel",)),
    )(xT, nxtT, w1b, b1, w2b, b2, whb, bh)

    # Back to the module's [batch, abstraction_dim] layout.
    return out_T.T[:B]


def init_params(key, abstraction_dim, action_dim, neu_size):
    """PyTorch-Linear-style init; weights in [out_features, in_features] layout,
    biases as [out, 1]; mu/log_std heads fused along the output axis."""
    def linear(k, fan_in, fan_out):
        bound = 1.0 / math.sqrt(fan_in)
        kw, kb = jax.random.split(k)
        w = jax.random.uniform(kw, (fan_out, fan_in), jnp.float32, -bound, bound)
        b = jax.random.uniform(kb, (fan_out, 1), jnp.float32, -bound, bound)
        return w, b

    k1, k2, k3, k4 = jax.random.split(key, 4)
    w1, b1 = linear(k1, abstraction_dim + action_dim, neu_size)
    w2, b2 = linear(k2, neu_size, neu_size)
    wmu, bmu = linear(k3, neu_size, abstraction_dim)
    wls, bls = linear(k4, neu_size, abstraction_dim)

    wh = jnp.concatenate([wmu, wls], axis=0)   # [2*ad, neu]
    bh = jnp.concatenate([bmu, bls], axis=0)   # [2*ad, 1]
    return (w1, b1, w2, b2, wh, bh)


def reference_forward(state, action, next_state, params):
    """Pure-JAX f32 reference mirroring the PyTorch module exactly."""
    (w1, b1, w2, b2, wh, bh) = params
    ad = state.shape[1]
    x = jnp.concatenate([state, action], axis=1)
    h1 = jax.nn.relu(x @ w1.T + b1[:, 0])
    h2 = jax.nn.relu(h1 @ w2.T + b2[:, 0])
    mu = h2 @ wh[:ad].T + bh[:ad, 0]
    log_std = h2 @ wh[ad:].T + bh[ad:, 0]
    std = jnp.exp(log_std)
    return (-((next_state - mu) ** 2) / (2.0 * std ** 2)
            - log_std - math.log(math.sqrt(2.0 * math.pi)))


if __name__ == "__main__":
    abstraction_dim, action_dim, neu_size = 8, 4, 32

    key = jax.random.PRNGKey(0)
    kp, ks, ka, kn = jax.random.split(key, 4)
    params = init_params(kp, abstraction_dim, action_dim, neu_size)

    # bf16 matmul operands (f32 accumulate / f32 epilogue) vs. f32 reference.
    ATOL, RTOL = 5e-2, 5e-2

    # Small case (single tile, no padding).
    batch = 8
    state = jax.random.normal(ks, (batch, abstraction_dim), jnp.float32)
    action = jax.random.normal(ka, (batch, action_dim), jnp.float32)
    next_state = jax.random.normal(kn, (batch, abstraction_dim), jnp.float32)

    log_prob = transition_net_forward(state, action, next_state, params)
    jax.block_until_ready(log_prob)
    ref = reference_forward(state, action, next_state, params)
    assert log_prob.shape == (batch, abstraction_dim)
    assert jnp.allclose(log_prob, ref, atol=ATOL, rtol=RTOL), "mismatch vs reference (B=8)"

    # Larger case: default heuristic (2 lane-aligned tiles) ...
    batch2 = 300
    ks2, ka2, kn2 = jax.random.split(jax.random.PRNGKey(1), 3)
    state2 = jax.random.normal(ks2, (batch2, abstraction_dim), jnp.float32)
    action2 = jax.random.normal(ka2, (batch2, action_dim), jnp.float32)
    next_state2 = jax.random.normal(kn2, (batch2, abstraction_dim), jnp.float32)

    log_prob2 = transition_net_forward(state2, action2, next_state2, params)
    jax.block_until_ready(log_prob2)
    ref2 = reference_forward(state2, action2, next_state2, params)
    assert log_prob2.shape == (batch2, abstraction_dim)
    assert jnp.allclose(log_prob2, ref2, atol=ATOL, rtol=RTOL), "mismatch vs reference (B=300, default tiles)"

    # ... and an explicit multi-tile path (tile_b=128 -> 3 tiles + lane padding).
    log_prob3 = transition_net_forward(state2, action2, next_state2, params, tile_b=128)
    jax.block_until_ready(log_prob3)
    assert log_prob3.shape == (batch2, abstraction_dim)
    assert jnp.allclose(log_prob3, ref2, atol=ATOL, rtol=RTOL), "mismatch vs reference (B=300, tile_b=128)"

    print("KERNEL_OK")
</pallas_src>

<mosaic_0001>
module attributes {stable_mosaic.version = 11 : i64} {
  func.func @_transition_kernel(%arg0: i32, %arg1: memref<12x8xbf16, #tpu.memory_space<vmem>>, %arg2: memref<8x8xf32, #tpu.memory_space<vmem>>, %arg3: memref<32x12xbf16, #tpu.memory_space<vmem>>, %arg4: memref<32x1xf32, #tpu.memory_space<vmem>>, %arg5: memref<32x32xbf16, #tpu.memory_space<vmem>>, %arg6: memref<32x1xf32, #tpu.memory_space<vmem>>, %arg7: memref<16x32xbf16, #tpu.memory_space<vmem>>, %arg8: memref<16x1xf32, #tpu.memory_space<vmem>>, %arg9: memref<8x8xf32, #tpu.memory_space<vmem>>) attributes {dimension_semantics = [#tpu.dimension_semantics<parallel>], iteration_bounds = array<i64: 1>, scalar_prefetch = 0 : i64, scratch_operands = 0 : i64, tpu.core_type = #tpu.core_type<tc>, window_params = [{transform_indices = @transform_0, window_bounds = array<i64: 12, 8>}, {transform_indices = @transform_1, window_bounds = array<i64: 8, 8>}, {pipeline_mode = #tpu.pipeline_mode<synchronous>, transform_indices = @transform_2, window_bounds = array<i64: 32, 12>}, {pipeline_mode = #tpu.pipeline_mode<synchronous>, transform_indices = @transform_3, window_bounds = array<i64: 32, 1>}, {pipeline_mode = #tpu.pipeline_mode<synchronous>, transform_indices = @transform_4, window_bounds = array<i64: 32, 32>}, {pipeline_mode = #tpu.pipeline_mode<synchronous>, transform_indices = @transform_5, window_bounds = array<i64: 32, 1>}, {pipeline_mode = #tpu.pipeline_mode<synchronous>, transform_indices = @transform_6, window_bounds = array<i64: 16, 32>}, {pipeline_mode = #tpu.pipeline_mode<synchronous>, transform_indices = @transform_7, window_bounds = array<i64: 16, 1>}, {transform_indices = @transform_8, window_bounds = array<i64: 8, 8>}]} {
    %c0 = arith.constant 0 : index
    %c0_0 = arith.constant 0 : index
    %0 = vector.load %arg3[%c0, %c0_0] : memref<32x12xbf16, #tpu.memory_space<vmem>>, vector<32x12xbf16>
    %c0_1 = arith.constant 0 : index
    %c0_2 = arith.constant 0 : index
    %1 = vector.load %arg1[%c0_1, %c0_2] : memref<12x8xbf16, #tpu.memory_space<vmem>>, vector<12x8xbf16>
    %cst = arith.constant dense<0.000000e+00> : vector<32x8xf32>
    %2 = tpu.matmul %0, %1, %cst {dimension_numbers = #tpu.dot_dimension_numbers<[1], [0], [0], [1], [0, 0, 1, 1], [], []>} : vector<32x12xbf16>, vector<12x8xbf16>, vector<32x8xf32> -> vector<32x8xf32>
    %c0_3 = arith.constant 0 : index
    %c0_4 = arith.constant 0 : index
    %3 = vector.load %arg4[%c0_3, %c0_4] : memref<32x1xf32, #tpu.memory_space<vmem>>, vector<32x1xf32>
    %4 = vector.broadcast %3 : vector<32x1xf32> to vector<32x8xf32>
    %5 = arith.addf %2, %4 : vector<32x8xf32>
    %cst_5 = arith.constant 0.000000e+00 : f32
    %6 = vector.broadcast %cst_5 : f32 to vector<32x8xf32>
    %7 = arith.maximumf %5, %6 : vector<32x8xf32>
    %8 = arith.truncf %7 : vector<32x8xf32> to vector<32x8xbf16>
    %c0_6 = arith.constant 0 : index
    %c0_7 = arith.constant 0 : index
    %9 = vector.load %arg5[%c0_6, %c0_7] : memref<32x32xbf16, #tpu.memory_space<vmem>>, vector<32x32xbf16>
    %cst_8 = arith.constant dense<0.000000e+00> : vector<32x8xf32>
    %10 = tpu.matmul %9, %8, %cst_8 {dimension_numbers = #tpu.dot_dimension_numbers<[1], [0], [0], [1], [0, 0, 1, 1], [], []>} : vector<32x32xbf16>, vector<32x8xbf16>, vector<32x8xf32> -> vector<32x8xf32>
    %c0_9 = arith.constant 0 : index
    %c0_10 = arith.constant 0 : index
    %11 = vector.load %arg6[%c0_9, %c0_10] : memref<32x1xf32, #tpu.memory_space<vmem>>, vector<32x1xf32>
    %12 = vector.broadcast %11 : vector<32x1xf32> to vector<32x8xf32>
    %13 = arith.addf %10, %12 : vector<32x8xf32>
    %cst_11 = arith.constant 0.000000e+00 : f32
    %14 = vector.broadcast %cst_11 : f32 to vector<32x8xf32>
    %15 = arith.maximumf %13, %14 : vector<32x8xf32>
    %16 = arith.truncf %15 : vector<32x8xf32> to vector<32x8xbf16>
    %c0_12 = arith.constant 0 : index
    %c0_13 = arith.constant 0 : index
    %17 = vector.load %arg7[%c0_12, %c0_13] : memref<16x32xbf16, #tpu.memory_space<vmem>>, vector<16x32xbf16>
    %cst_14 = arith.constant dense<0.000000e+00> : vector<16x8xf32>
    %18 = tpu.matmul %17, %16, %cst_14 {dimension_numbers = #tpu.dot_dimension_numbers<[1], [0], [0], [1], [0, 0, 1, 1], [], []>} : vector<16x32xbf16>, vector<32x8xbf16>, vector<16x8xf32> -> vector<16x8xf32>
    %c0_15 = arith.constant 0 : index
    %c0_16 = arith.constant 0 : index
    %19 = vector.load %arg8[%c0_15, %c0_16] : memref<16x1xf32, #tpu.memory_space<vmem>>, vector<16x1xf32>
    %20 = vector.broadcast %19 : vector<16x1xf32> to vector<16x8xf32>
    %21 = arith.addf %18, %20 : vector<16x8xf32>
    %22 = vector.extract_strided_slice %21 {offsets = [0, 0], sizes = [8, 8], strides = [1, 1]} : vector<16x8xf32> to vector<8x8xf32>
    %23 = vector.extract_strided_slice %21 {offsets = [8, 0], sizes = [8, 8], strides = [1, 1]} : vector<16x8xf32> to vector<8x8xf32>
    %c0_17 = arith.constant 0 : index
    %c0_18 = arith.constant 0 : index
    %24 = vector.load %arg2[%c0_17, %c0_18] : memref<8x8xf32, #tpu.memory_space<vmem>>, vector<8x8xf32>
    %25 = arith.subf %24, %22 : vector<8x8xf32>
    %cst_19 = arith.constant -2.000000e+00 : f32
    %26 = vector.broadcast %cst_19 : f32 to vector<8x8xf32>
    %27 = arith.mulf %26, %23 : vector<8x8xf32>
    %28 = math.exp %27 : vector<8x8xf32>
    %cst_20 = arith.constant -5.000000e-01 : f32
    %29 = vector.broadcast %cst_20 : f32 to vector<8x8xf32>
    %30 = arith.mulf %29, %25 : vector<8x8xf32>
    %31 = arith.mulf %30, %25 : vector<8x8xf32>
    %32 = arith.mulf %31, %28 : vector<8x8xf32>
    %33 = arith.subf %32, %23 : vector<8x8xf32>
    %cst_21 = arith.constant 0.918938517 : f32
    %34 = vector.broadcast %cst_21 : f32 to vector<8x8xf32>
    %35 = arith.subf %33, %34 : vector<8x8xf32>
    %c0_22 = arith.constant 0 : index
    %c0_23 = arith.constant 0 : index
    %36 = vector.load %arg9[%c0_22, %c0_23] : memref<8x8xf32, #tpu.memory_space<vmem>>, vector<8x8xf32>
    tpu.vector_store %arg9[%c0_22, %c0_23], %35 {strides = array<i32>} : memref<8x8xf32, #tpu.memory_space<vmem>>, vector<8x8xf32>,
    return
  }
  func.func @transform_0(%arg0: i32) -> (i32, i32) {
    %c0_i32 = arith.constant 0 : i32
    %c0_i32_0 = arith.constant 0 : i32
    return %c0_i32, %arg0 : i32, i32
  }
  func.func @transform_1(%arg0: i32) -> (i32, i32) {
    %c0_i32 = arith.constant 0 : i32
    %c0_i32_0 = arith.constant 0 : i32
    return %c0_i32, %arg0 : i32, i32
  }
  func.func @transform_2(%arg0: i32) -> (i32, i32) {
    %c0_i32 = arith.constant 0 : i32
    %c0_i32_0 = arith.constant 0 : i32
    %c0_i32_1 = arith.constant 0 : i32
    return %c0_i32, %c0_i32_0 : i32, i32
  }
  func.func @transform_3(%arg0: i32) -> (i32, i32) {
    %c0_i32 = arith.constant 0 : i32
    %c0_i32_0 = arith.constant 0 : i32
    %c0_i32_1 = arith.constant 0 : i32
    return %c0_i32, %c0_i32_0 : i32, i32
  }
  func.func @transform_4(%arg0: i32) -> (i32, i32) {
    %c0_i32 = arith.constant 0 : i32
    %c0_i32_0 = arith.constant 0 : i32
    %c0_i32_1 = arith.constant 0 : i32
    return %c0_i32, %c0_i32_0 : i32, i32
  }
  func.func @transform_5(%arg0: i32) -> (i32, i32) {
    %c0_i32 = arith.constant 0 : i32
    %c0_i32_0 = arith.constant 0 : i32
    %c0_i32_1 = arith.constant 0 : i32
    return %c0_i32, %c0_i32_0 : i32, i32
  }
  func.func @transform_6(%arg0: i32) -> (i32, i32) {
    %c0_i32 = arith.constant 0 : i32
    %c0_i32_0 = arith.constant 0 : i32
    %c0_i32_1 = arith.constant 0 : i32
    return %c0_i32, %c0_i32_0 : i32, i32
  }
  func.func @transform_7(%arg0: i32) -> (i32, i32) {
    %c0_i32 = arith.constant 0 : i32
    %c0_i32_0 = arith.constant 0 : i32
    %c0_i32_1 = arith.constant 0 : i32
    return %c0_i32, %c0_i32_0 : i32, i32
  }
  func.func @transform_8(%arg0: i32) -> (i32, i32) {
    %c0_i32 = arith.constant 0 : i32
    %c0_i32_0 = arith.constant 0 : i32
    return %c0_i32, %arg0 : i32, i32
  }
}

</mosaic_0001>

<bundles_post_ra>
// kernel: tpu_custom_call.1
= control target key start
LH: loop header
LB: loop body
LE: loop exit
PB: predicated region body
PF: predicated region fallthrough
CT: control target
= control target key end

     0   :  { %vm83_vm0 = vcmask 1045504   ;;  %vm76_vm1 = vcmask 97280   ;;  %v412_v5 = vmov 0   ;;  %s518_s0 = inlined_call_operand.vmem [shape: bf16[12,8], index: 0, kind: input, shape index: {}]   ;;  %s519_s1 = inlined_call_operand.vmem [shape: f32[8,8], index: 1, kind: input, shape index: {}]   ;;  %s520_s2 = inlined_call_operand.vmem [shape: bf16[32,12], index: 2, kind: input, shape index: {}]   ;;  %s521_s3 = inlined_call_operand.vmem [shape: f32[32,1], index: 3, kind: input, shape index: {}]   ;;  %s522_s4 = inlined_call_operand.vmem [shape: bf16[32,32], index: 4, kind: input, shape index: {}]   ;;  %s523_s5 = inlined_call_operand.vmem [shape: f32[32,1], index: 5, kind: input, shape index: {}]   ;;  %s524_s6 = inlined_call_operand.vmem [shape: bf16[16,32], index: 6, kind: input, shape index: {}]   ;;  %s525_s7 = inlined_call_operand.vmem [shape: f32[16,1], index: 7, kind: input, shape index: {}]   ;;  %s526_s8 = inlined_call_operand.hbm [shape: f32[8,8], index: 8, kind: output, shape index: {}]  }
   0x1   :  { %v382_v0 = vld [vmem:[%s518_s0] sm:$0x3f]   ;;  %v384_v3 = vld [vmem:[%s520_s2 + $0x8] sm:$0xff]   ;;  %v39_v4 = vld [vmem:[%s521_s3 + $0x10] sm:$0xff]  ;;  %380 = vset.pattern.permute.xlu0 %v412_v5  ;;  %381 = vset.pattern.permute.xlu1 %v412_v5 }
   0x2   :  { %v383_v1 = vld [vmem:[%s520_s2] sm:$0xff]   ;;  %375 = vmatprep.subr.msk.bf16.mxu0 %vm83_vm0, %v382_v0  ;;  %v85_v2 = vsel %vm83_vm0, %v382_v0, 0  ;;  %53 = vperm.xlu0 %380, %v39_v4   ;;  %v40_v7 = vld [vmem:[%s521_s3 + $0x18] sm:$0xff]  ;;  %v38_v8 = vld [vmem:[%s521_s3 + $0x8] sm:$0xff] }
   0x3   :  { %354 = vmatpush3.bf16.msra.mxu0 %v85_v2  ;;  %355 = vmatprep.mubr.msk.bf16.mxu0 %vm76_vm1, %v383_v1  ;;  %v37_v6 = vld [vmem:[%s521_s3] sm:$0xff] }
   0x4   :  { %43 = vperm.xlu1 %381, %v37_v6  }
   0x6   :  { %356 = vmatmul.mubr.msk.bf16.vlgmr.msra.gmra.mxu0 %vm76_vm1, %v384_v3 }
   0x7   :  { %13 = vsyncpa [#allocation3], 0  ;;  %58 = vperm.xlu0 %380, %v40_v7   ;;  %v148_v9 = vld [vmem:[%s523_s5 + $0x10] sm:$0xff]  ;;  %v149_v10 = vld [vmem:[%s523_s5 + $0x18] sm:$0xff]  ;;  %vm180_vm2 = vcmask 261120   ;;  %v413_v35 = vmov 0.0  }
   0x8   :  { %48 = vperm.xlu1 %381, %v38_v8   ;;  %v146_v11 = vld [vmem:[%s523_s5] sm:$0xff]  ;;  %v147_v12 = vld [vmem:[%s523_s5 + $0x8] sm:$0xff]  ;;  %367 = vmatprep.subr.bf16.mxu0 %v413_v35  ;;  %vm414_vm3 = vmmov 0   ;;  %vm315_vm4 = vcmask 64512  }
   0x9   :  { %v245_v13 = vld [vmem:[%s525_s7 + $0x8] sm:$0xff]  ;;  %v244_v14 = vld [vmem:[%s525_s7] sm:$0xff]  ;;  %371 = vmatprep.mubr.msk.bf16.mxu0 %vm414_vm3, %v413_v35 }
   0xa   :  { %v385_v15 = vld [vmem:[%s522_s4] sm:$0xff]   ;;  %v386_v34 = vld [vmem:[%s522_s4 + $0x8] sm:$0xff]  }
   0xb   :  { %162 = vperm.xlu0 %380, %v148_v9   ;;  %363 = vmatprep.mubr.msk.bf16.mxu1 %vm180_vm2, %v385_v15  ;;  %v387_v54 = vld [vmem:[%s524_s6] sm:$0xff]   ;;  %s415_s6 = smov [#allocation2]  }
   0xc   :  { %167 = vperm.xlu1 %381, %v149_v10   ;;  %v305_v1 = vld [vmem:[%s519_s1] sm:$0xff]  ;;  %s323_s11 = sshll.u32 %s415_s6, 4  ;;  %s324_s11 = int_to_ptr.vmem [resolvable:$true] %s323_s11 }
   0xd   :  { %s390_s12 = scalar_lea.vmem %s324_s11, 128  ;;  %p395_p1 = scmp.lt.s32.totalorder %s324_s11, %s324_s11 }
   0xe   :  { %p391_p0 = scmp.ne.s32.totalorder %s324_s11, %s390_s12  ;;  %p396_p2 = scmp.lt.s32.totalorder %s390_s12, %s390_s12 }
   0xf   :  { %152 = vperm.xlu0 %380, %v146_v11  }
  0x10   :  { %157 = vperm.xlu1 %381, %v147_v12   ;;  %p397_p3 = por %p396_p2, %p395_p1 }
  0x12   :  { %p398_p4 = pnand %p397_p3, %p391_p0 }
  0x13   :  { %253 = vperm.xlu0 %380, %v245_v13  }
  0x14   :  { %248 = vperm.xlu1 %381, %v244_v14  }
  0x7d   :  { %v54_v16 = vpop.permute.xlu0 %53 }
  0x7f   :  { %v44_v17 = vpop.permute.xlu1 %43 }
  0x82   :  { %v59_v21 = vpop.permute.xlu0 %58 }
  0x83   :  { %v49_v25 = vpop.permute.xlu1 %48 }
  0x86   :  { %v163_v36 = vpop.permute.xlu0 %162 }
  0x87   :  { %v168_v37 = vpop.permute.xlu1 %167 }
  0x8a   :  { %v153_v42 = vpop.permute.xlu0 %152 }
  0x8b   :  { %v158_v44 = vpop.permute.xlu1 %157 }
  0x8e   :  { %v254_v57 = vpop.permute.xlu0 %253 }
  0x8f   :  { %v249_v63 = vpop.permute.xlu1 %248 }
  0xc6   :  { %v357_v18 = vpop.f32.mrf.mxu0 }
  0xc7   :  { %v130_v20 = vadd.f32 %v357_v18, %v54_v16 }
  0xc8   :  { %v121_v19 = vpop.f32.mrf.mxu0 }
  0xc9   :  { %v122_v23 = vadd.f32 %v121_v19, %v44_v17  ;;  %v138_v27 = vmax.f32 %v130_v20, 0.0 }
  0xca   :  { %v358_v22 = vpop.f32.mrf.mxu0 }
  0xcb   :  { %v133_v24 = vadd.f32 %v358_v22, %v59_v21  ;;  %v136_v30 = vmax.f32 %v122_v23, 0.0 }
  0xcc   :  { %v124_v26 = vpop.f32.mrf.mxu0 }
  0xcd   :  { %v139_v28 = vmax.f32 %v133_v24, 0.0  ;;  %v125_v29 = vadd.f32 %v124_v26, %v49_v25 }
  0xcf   :  { %v137_v31 = vmax.f32 %v125_v29, 0.0  ;;  %v141_v32 = vpack.c.bf16 %v139_v28, %v138_v27 }
  0xd1   :  { %v140_v33 = vpack.c.bf16 %v137_v31, %v136_v30  ;;  %359 = vmatprep.subr.bf16.mxu1 %v141_v32 }
  0xd2   :  { %360 = vmatpush3.bf16.msra.mxu1 %v141_v32 }
  0xd3   :  { %361 = vmatprep.subr.bf16.mxu1 %v140_v33 }
  0xd6   :  { %362 = vmatpush3.bf16.msra.mxu1 %v140_v33 }
  0xd9   :  { %364 = vmatmul.mubr.msk.bf16.vlgmr.msra.gmra.mxu1 %vm180_vm2, %v386_v34 }
 0x199   :  { %v365_v38 = vpop.f32.mrf.mxu1 }
 0x19a   :  { %v230_v40 = vadd.f32 %v365_v38, %v163_v36 }
 0x19b   :  { %v221_v39 = vpop.f32.mrf.mxu1 }
 0x19c   :  { %v238_v46 = vmax.f32 %v230_v40, 0.0  ;;  %v222_v47 = vadd.f32 %v221_v39, %v153_v42 }
 0x19d   :  { %v366_v41 = vpop.f32.mrf.mxu1 }
 0x19e   :  { %v233_v43 = vadd.f32 %v366_v41, %v168_v37  ;;  %v236_v52 = vmax.f32 %v222_v47, 0.0 }
 0x19f   :  { %v224_v45 = vpop.f32.mrf.mxu1 }
 0x1a0   :  { %v239_v48 = vmax.f32 %v233_v43, 0.0  ;;  %v225_v49 = vadd.f32 %v224_v45, %v158_v44 }
 0x1a2   :  { %v241_v50 = vpack.c.bf16 %v239_v48, %v238_v46  ;;  %v237_v51 = vmax.f32 %v225_v49, 0.0 }
 0x1a4   :  { %368 = vmatpush3.bf16.msra.mxu0 %v241_v50  ;;  %v240_v53 = vpack.c.bf16 %v237_v51, %v236_v52 }
 0x1a5   :  { %369 = vmatprep.subr.bf16.mxu0 %v413_v35 }
 0x1a8   :  { %370 = vmatpush3.bf16.msra.mxu0 %v240_v53 }
 0x1ab   :  { %372 = vmatmul.mubr.msk.bf16.vlgmr.msra.gmra.mxu0 %vm180_vm2, %v387_v54 }
 0x26b   :  { %v298_v55 = vpop.f32.mrf.mxu0 }
 0x26c   :  { %v299_v0 = vadd.f32 %v298_v55, %v249_v63 }
 0x26d   :  { %v373_v56 = vpop.f32.mrf.mxu0 }
 0x26e   :  { %v306_v2 = vsub.f32 %v305_v1, %v299_v0 }
 0x26f   :  { %v301_v58 = vpop.f32.mrf.mxu0 }
 0x270   :  { %v302_v59 = vadd.f32 %v301_v58, %v254_v57  ;;  %v310_v3 = vmul.f32 -0.5, %v306_v2 }
 0x271   :  { %v374_v60 = vpop.f32.mrf.mxu0 }
 0x272   :  { %v307_v61 = vmul.f32 -2.0, %v302_v59  ;;  %v311_v4 = vmul.f32 %v310_v3, %v306_v2 }
 0x274   :  { %v308_v62 = vmul.f32 1.442695, %v307_v61 }
 0x276   :  { %388 = vpow2.f32 %v308_v62 }
 0x283   :  { %v389_v5 = vpop.eup %388 }
 0x284   :  { %v312_v6 = vmul.f32 %v389_v5, %v311_v4 }
 0x286   :  { %v313_v7 = vsub.f32 %v312_v6, %v302_v59 }
 0x288   :  { %v342_v8 = vadd.f32 -0.9189385, %v313_v7 }
 0x28a   :  { %316 = vst.msk [vmem:[#allocation2] sm:$0xff] %vm315_vm4, %v342_v8 }
 0x28b   :  { %401 = shalt.err (!%p398_p4)
}
 0x28c   :  { %326 = dma.vmem_to_hbm [thread:$0]  %s324_s11, 128, %s526_s8, [#allocation3]  }
 0x28d   :  { %410 = dma.done.wait [#allocation3], 128  }
 0x28e   :  { %411 = vsyncadd [#allocation3], 4294967168 }
 0x28f   :  { %330 = vsyncpa [#allocation3], 1 }

</bundles_post_ra>
